<compile_context>
chip_gen: v7x
topology: tpu7x:2x2x1
jax: 0.10.0
libtpu: 0.0.40
codegen_flags: <defaults>
</compile_context>

<pallas_src>
import functools

import jax
import jax.numpy as jnp
from jax import lax
from jax.experimental import pallas as pl
from jax.experimental.pallas import tpu as pltpu


# --------------------------------------------------------------------------- #
# Kernels
# --------------------------------------------------------------------------- #
def _masked_max_kernel(h_ref, m_ref, o_ref, *, seq_len, block_s, tail):
    # h_ref: (TB, TS, TH)   m_ref: (TB, TS, 1)   o_ref: (TB, TH)
    s_idx = pl.program_id(2)

    @pl.when(s_idx == 0)
    def _():
        o_ref[...] = jnp.full(o_ref.shape, -jnp.inf, dtype=o_ref.dtype)

    h = h_ref[...]                               # native dtype, no f32 upcast
    keep = m_ref[...] != 0                       # (TB, TS, 1) lane-broadcasts
    if tail:                                     # static: only if S % TS != 0
        pos = lax.broadcasted_iota(jnp.int32, (1, block_s, 1), 1)
        keep = jnp.logical_and(keep, pos < (seq_len - s_idx * block_s))
    tile_max = jnp.max(jnp.where(keep, h, -jnp.inf), axis=1)       # (TB, TH)
    o_ref[...] = jnp.maximum(o_ref[...], tile_max)


def _plain_max_kernel(h_ref, o_ref, *, seq_len, block_s, tail):
    # h_ref: (TB, TS, TH)   o_ref: (TB, TH)
    s_idx = pl.program_id(2)

    @pl.when(s_idx == 0)
    def _():
        o_ref[...] = jnp.full(o_ref.shape, -jnp.inf, dtype=o_ref.dtype)

    h = h_ref[...]
    if tail:                                     # static: only if S % TS != 0
        pos = lax.broadcasted_iota(jnp.int32, (1, block_s, 1), 1)
        h = jnp.where(pos < (seq_len - s_idx * block_s), h, -jnp.inf)
    o_ref[...] = jnp.maximum(o_ref[...], jnp.max(h, axis=1))


# --------------------------------------------------------------------------- #
# Tiling helpers
# --------------------------------------------------------------------------- #
def _sublane_pack(dt):
    """Sublane packing factor: 8 for 4-byte, 16 for 2-byte, 32 for 1-byte."""
    return max(8, 32 // max(1, jnp.dtype(dt).itemsize))


def _vmem_capacity_bytes():
    """Per-core VMEM capacity; conservative (v7x, 64 MiB) fallback on failure."""
    try:
        info = pltpu.get_tpu_info()
        cap = getattr(info, "vmem_capacity_bytes", None)
        if cap:
            return int(cap)
    except Exception:
        pass
    return 64 * 1024 * 1024


def _pick_ts(S, TB, TH, itemsize, align, tile_budget):
    """Largest S-tile (aligned to `align`, or all of S) whose double-buffered
    hidden block fits in `tile_budget` bytes."""
    if 2 * TB * S * TH * itemsize <= tile_budget:
        return S
    max_ts = tile_budget // (2 * TB * TH * itemsize)
    ts = max(align, (max_ts // align) * align)
    return min(ts, S)


# --------------------------------------------------------------------------- #
# Wrapper
# --------------------------------------------------------------------------- #
def max_pooling(hidden_states, mask=None, *, tile_budget_bytes=None):
    """Pallas implementation of MaxPooling.forward.

    hidden_states: (B, S, H) float array
    mask:          (B, S) or None (nonzero = keep, zero = masked out)
    returns:       (B, H), dtype of hidden_states
    Note: rows whose mask is entirely zero produce -inf (matches the PyTorch
    masked_fill + max semantics).
    """
    B, S, H = hidden_states.shape
    dtype = hidden_states.dtype
    itemsize = jnp.dtype(dtype).itemsize

    vmem_cap = _vmem_capacity_bytes()
    if tile_budget_bytes is None:
        tile_budget_bytes = vmem_cap // 3          # double-buffered hidden tile
    vmem_limit = int(vmem_cap * 0.65)

    # Batch rows per step: one full output sublane pack when possible.
    # No padding — the ragged last batch block relies on masked writeback and
    # per-row independence of the max reduction.
    pack_out = _sublane_pack(dtype)
    TB = pack_out if B >= pack_out else B
    b_blocks = pl.cdiv(B, TB)

    # Split H (fully independent lanes) when the batch axis alone cannot feed
    # both TensorCores on dual-core parts (v7x).  Cheap/neutral on 1-TC chips.
    if b_blocks == 1 and H >= 256 and H % 128 == 0:
        TH = max(128, ((H // 2) // 128) * 128)
    else:
        TH = H
    h_blocks = pl.cdiv(H, TH)

    align = _sublane_pack(dtype)
    if mask is not None:
        if mask.dtype == jnp.bool_:
            mask = mask.astype(jnp.int8)           # keep mask narrow; no f32 pass
        align = max(align, _sublane_pack(mask.dtype))

    TS = _pick_ts(S, TB, TH, itemsize, align, tile_budget_bytes)
    s_blocks = pl.cdiv(S, TS)
    tail = (S % TS) != 0

    grid = (b_blocks, h_blocks, s_blocks)

    in_specs = [pl.BlockSpec((TB, TS, TH), lambda b, h, s: (b, s, h))]
    args = [hidden_states]
    if mask is not None:
        # (B, S, 1): S lands on sublanes (same axis as the hidden tile), the
        # width-1 lane axis broadcasts inside the kernel without a relayout.
        in_specs.append(pl.BlockSpec((TB, TS, 1), lambda b, h, s: (b, s, 0)))
        args.append(mask.reshape(B, S, 1))
        kernel = functools.partial(_masked_max_kernel,
                                   seq_len=S, block_s=TS, tail=tail)
    else:
        kernel = functools.partial(_plain_max_kernel,
                                   seq_len=S, block_s=TS, tail=tail)

    return pl.pallas_call(
        kernel,
        out_shape=jax.ShapeDtypeStruct((B, H), dtype),
        grid_spec=pltpu.PrefetchScalarGridSpec(
            num_scalar_prefetch=0,
            grid=grid,
            in_specs=in_specs,
            # Same output block across the S axis -> running-max accumulator.
            out_specs=pl.BlockSpec((TB, TH), lambda b, h, s: (b, h)),
        ),
        compiler_params=pltpu.CompilerParams(
            dimension_semantics=("parallel", "parallel", "arbitrary"),
            vmem_limit_bytes=vmem_limit,
        ),
    )(*args)


# --------------------------------------------------------------------------- #
# Self-check
# --------------------------------------------------------------------------- #
if __name__ == "__main__":
    key = jax.random.PRNGKey(0)
    keys = jax.random.split(key, 6)

    def ref_masked(h, m):
        return jnp.max(jnp.where(m[:, :, None] != 0, h, -jnp.inf), axis=1)

    # 1) Small case matching the module's (batch, seq, hidden) usage.
    B, S, H = 2, 8, 32
    hidden_states = jax.random.normal(keys[0], (B, S, H), dtype=jnp.float32)
    mask = (jax.random.uniform(keys[1], (B, S)) > 0.3).astype(jnp.float32)
    mask = mask.at[:, 0].set(1.0)  # every row keeps at least one position

    out_m = max_pooling(hidden_states, mask)
    out_p = max_pooling(hidden_states, None)
    jax.block_until_ready((out_m, out_p))
    assert out_m.shape == (B, H) and out_p.shape == (B, H)
    assert jnp.allclose(out_m, ref_masked(hidden_states, mask), atol=1e-6, rtol=1e-6)
    assert jnp.allclose(out_p, jnp.max(hidden_states, axis=1), atol=1e-6, rtol=1e-6)

    # 2) Single batch block + H split path (dual-core sharding on v7x).
    B2, S2, H2 = 2, 64, 256
    h2 = jax.random.normal(keys[2], (B2, S2, H2), dtype=jnp.float32)
    m2 = (jax.random.uniform(keys[3], (B2, S2)) > 0.5).astype(jnp.float32)
    m2 = m2.at[:, 0].set(1.0)
    out2_m = max_pooling(h2, m2)
    out2_p = max_pooling(h2, None)
    jax.block_until_ready((out2_m, out2_p))
    assert jnp.allclose(out2_m, ref_masked(h2, m2), atol=1e-6, rtol=1e-6)
    assert jnp.allclose(out2_p, jnp.max(h2, axis=1), atol=1e-6, rtol=1e-6)

    # 3) Ragged batch (B % 8 != 0, no pad) + S tiling with tail masking
    #    (tiny tile budget forces TS < S and S % TS != 0).
    B3, S3, H3 = 10, 100, 128
    h3 = jax.random.normal(keys[4], (B3, S3, H3), dtype=jnp.float32)
    m3 = (jax.random.uniform(keys[5], (B3, S3)) > 0.5).astype(jnp.float32)
    m3 = m3.at[:, 0].set(1.0)
    out3_m = max_pooling(h3, m3, tile_budget_bytes=64 * 1024)
    out3_p = max_pooling(h3, None, tile_budget_bytes=64 * 1024)
    jax.block_until_ready((out3_m, out3_p))
    assert jnp.allclose(out3_m, ref_masked(h3, m3), atol=1e-6, rtol=1e-6)
    assert jnp.allclose(out3_p, jnp.max(h3, axis=1), atol=1e-6, rtol=1e-6)

    print("KERNEL_OK")
</pallas_src>

<mosaic_0001>
module attributes {stable_mosaic.version = 11 : i64} {
  func.func @_masked_max_kernel(%arg0: i32, %arg1: i32, %arg2: i32, %arg3: memref<2x8x32xf32, #tpu.memory_space<vmem>>, %arg4: memref<2x8x1xf32, #tpu.memory_space<vmem>>, %arg5: memref<2x32xf32, #tpu.memory_space<vmem>>) attributes {dimension_semantics = [#tpu.dimension_semantics<parallel>, #tpu.dimension_semantics<parallel>, #tpu.dimension_semantics<arbitrary>], iteration_bounds = array<i64: 1, 1, 1>, scalar_prefetch = 0 : i64, scratch_operands = 0 : i64, tpu.core_type = #tpu.core_type<tc>, window_params = [{transform_indices = @transform_0, window_bounds = array<i64: 2, 8, 32>}, {transform_indices = @transform_1, window_bounds = array<i64: 2, 8, 1>}, {transform_indices = @transform_2, window_bounds = array<i64: 2, 32>}]} {
    %c0_i32 = arith.constant 0 : i32
    %0 = arith.cmpi eq, %arg2, %c0_i32 : i32
    %1 = arith.extui %0 : i1 to i32
    %c0_i32_0 = arith.constant 0 : i32
    %2 = arith.cmpi ne, %1, %c0_i32_0 : i32
    scf.if %2 {
      %cst_12 = arith.constant 0xFF800000 : f32
      %15 = vector.broadcast %cst_12 : f32 to vector<2x32xf32>
      %c0_13 = arith.constant 0 : index
      %c0_14 = arith.constant 0 : index
      %16 = vector.load %arg5[%c0_13, %c0_14] : memref<2x32xf32, #tpu.memory_space<vmem>>, vector<2x32xf32>
      tpu.vector_store %arg5[%c0_13, %c0_14], %15 {strides = array<i32>} : memref<2x32xf32, #tpu.memory_space<vmem>>, vector<2x32xf32>,
    } else {
    }
    %c0 = arith.constant 0 : index
    %c0_1 = arith.constant 0 : index
    %c0_2 = arith.constant 0 : index
    %3 = vector.load %arg3[%c0, %c0_1, %c0_2] : memref<2x8x32xf32, #tpu.memory_space<vmem>>, vector<2x8x32xf32>
    %c0_3 = arith.constant 0 : index
    %c0_4 = arith.constant 0 : index
    %c0_5 = arith.constant 0 : index
    %4 = vector.load %arg4[%c0_3, %c0_4, %c0_5] : memref<2x8x1xf32, #tpu.memory_space<vmem>>, vector<2x8x1xf32>
    %cst = arith.constant 0.000000e+00 : f32
    %5 = vector.broadcast %cst : f32 to vector<2x8x1xf32>
    %6 = arith.cmpf one, %4, %5 : vector<2x8x1xf32>
    %cst_6 = arith.constant 0xFF800000 : f32
    %7 = vector.shape_cast %6 : vector<2x8x1xi1> to vector<2x8x1xi1>
    %8 = vector.broadcast %7 : vector<2x8x1xi1> to vector<2x8x32xi1>
    %9 = vector.broadcast %cst_6 : f32 to vector<2x8x32xf32>
    %10 = arith.select %8, %3, %9 : vector<2x8x32xi1>, vector<2x8x32xf32>
    %cst_7 = arith.constant dense<0xFF800000> : vector<2x32xf32>
    %11 = vector.multi_reduction <maximumf>, %10, %cst_7 [1] : vector<2x8x32xf32> to vector<2x32xf32>
    %c0_8 = arith.constant 0 : index
    %c0_9 = arith.constant 0 : index
    %12 = vector.load %arg5[%c0_8, %c0_9] : memref<2x32xf32, #tpu.memory_space<vmem>>, vector<2x32xf32>
    %13 = arith.maximumf %12, %11 : vector<2x32xf32>
    %c0_10 = arith.constant 0 : index
    %c0_11 = arith.constant 0 : index
    %14 = vector.load %arg5[%c0_10, %c0_11] : memref<2x32xf32, #tpu.memory_space<vmem>>, vector<2x32xf32>
    tpu.vector_store %arg5[%c0_10, %c0_11], %13 {strides = array<i32>} : memref<2x32xf32, #tpu.memory_space<vmem>>, vector<2x32xf32>,
    return
  }
  func.func @transform_0(%arg0: i32, %arg1: i32, %arg2: i32) -> (i32, i32, i32) {
    %c0_i32 = arith.constant 0 : i32
    return %arg0, %arg2, %arg1 : i32, i32, i32
  }
  func.func @transform_1(%arg0: i32, %arg1: i32, %arg2: i32) -> (i32, i32, i32) {
    %c0_i32 = arith.constant 0 : i32
    %c0_i32_0 = arith.constant 0 : i32
    return %arg0, %arg2, %c0_i32 : i32, i32, i32
  }
  func.func @transform_2(%arg0: i32, %arg1: i32, %arg2: i32) -> (i32, i32) {
    %c0_i32 = arith.constant 0 : i32
    return %arg0, %arg1 : i32, i32
  }
}

</mosaic_0001>

<bundles_post_ra>
// kernel: tpu_custom_call.1
= control target key start
LH: loop header
LB: loop body
LE: loop exit
PB: predicated region body
PF: predicated region fallthrough
CT: control target
= control target key end

     0   :  { %s146_s0 = inlined_call_operand.vmem [shape: f32[2,8,32], index: 0, kind: input, shape index: {}]   ;;  %s147_s1 = inlined_call_operand.vmem [shape: f32[2,8,1], index: 1, kind: input, shape index: {}]   ;;  %s148_s2 = inlined_call_operand.hbm [shape: f32[2,32], index: 2, kind: output, shape index: {}]  }
   0x1   :  { %v20_v0 = vld [vmem:[%s147_s1] sm:$0xff]  ;;  %v21_v1 = vld [vmem:[%s147_s1 + $0x8] sm:$0xff] }
   0x2   :  { %7 = vsyncpa [#allocation3], 0  ;;  %v102_v2 = vmov 0   ;;  %vm22_vm0 = vcmp.ne.f32.partialorder %v20_v0, 0.0  ;;  %vm23_vm1 = vcmp.ne.f32.partialorder %v21_v1, 0.0  ;;  %vm16_vm2 = vcmask 254976  }
   0x3   :  { %77 = vset.pattern.permute.xlu0 %v102_v2  ;;  %v24_v3 = vsel %vm22_vm0, 1, %v102_v2  ;;  %v25_v4 = vsel %vm23_vm1, 1, %v102_v2  ;;  %v103_v5 = vmov -inf   ;;  %v18_v6 = vld [vmem:[%s146_s0] sm:$0xff]  ;;  %vm36_vm3 = vcmask 261120   ;;  %v19_v10 = vld [vmem:[%s146_s0 + $0x8] sm:$0xff] }
   0x4   :  { %27 = vperm.xlu0 %77, %v24_v3   ;;  %17 = vst.msk [vmem:[#allocation2] sm:$0x3] %vm16_vm2, %v103_v5  ;;  %vm54_vm6 = vcmask 1041409   ;;  %s104_s16 = smov [#allocation2]  }
   0x5   :  { %s66_s0 = sshll.u32 %s104_s16, 4  ;;  %s67_s0 = int_to_ptr.vmem [resolvable:$true] %s66_s0 }
   0x6   :  { %s78_s17 = scalar_lea.vmem %s67_s0, 32  ;;  %p83_p1 = scmp.lt.s32.totalorder %s67_s0, %s67_s0 }
   0x7   :  { %p79_p0 = scmp.ne.s32.totalorder %s67_s0, %s78_s17  ;;  %p84_p2 = scmp.lt.s32.totalorder %s78_s17, %s78_s17 }
   0x8   :  { %30 = vperm.xlu0 %77, %v25_v4  }
   0x9   :  { %p85_p3 = por %p84_p2, %p83_p1 }
   0xb   :  { %v51_v26 = vld [vmem:[#allocation2] sm:$0x3]  ;;  %p86_p4 = pnand %p85_p3, %p79_p0 }
  0x83   :  { %v28_v7 = vpop.permute.xlu0 %27 }
  0x84   :  { %vm32_vm4 = vcmp.eq.s32.totalorder %v28_v7, 1 }
  0x85   :  { %v34_v8 = vsel %vm32_vm4, %v18_v6, -inf }
  0x86   :  { %v37_v9 = vsel %vm36_vm3, %v34_v8, -inf }
  0x87   :  { %v38_v11 = vrot.slane %v37_v9, 4  ;;  %v31_v12 = vpop.permute.xlu0 %30 }
  0x88   :  { %vm33_vm5 = vcmp.eq.s32.totalorder %v31_v12, 1 }
  0x89   :  { %v39_v13 = vmax.f32 %v37_v9, %v38_v11  ;;  %v35_v14 = vsel %vm33_vm5, %v19_v10, -inf }
  0x8a   :  { %v44_v15 = vsel %vm36_vm3, %v35_v14, -inf }
  0x8b   :  { %v40_v16 = vrot.slane %v39_v13, 2  ;;  %v45_v17 = vrot.slane %v44_v15, 4 }
  0x8d   :  { %v41_v18 = vmax.f32 %v39_v13, %v40_v16  ;;  %v46_v19 = vmax.f32 %v44_v15, %v45_v17 }
  0x8f   :  { %v47_v20 = vrot.slane %v46_v19, 2  ;;  %v42_v21 = vrot.slane %v41_v18, 1 }
  0x91   :  { %v48_v22 = vmax.f32 %v46_v19, %v47_v20  ;;  %v43_v24 = vmax.f32 %v41_v18, %v42_v21 }
  0x93   :  { %v49_v23 = vrot.slane %v48_v22, 1 }
  0x95   :  { %v50_v25 = vmax.f32 %v48_v22, %v49_v23 }
  0x97   :  { %v55_v27 = vsel %vm54_vm6, %v50_v25, %v43_v24 }
  0x98   :  { %v57_v28 = vmax.f32 %v51_v26, %v55_v27 }
  0x9a   :  { %59 = vst.msk [vmem:[#allocation2] sm:$0x3] %vm16_vm2, %v57_v28 }
  0x9b   :  { %89 = shalt.err (!%p86_p4)
}
  0x9c   :  { %s90_s20 = scalar_lea.hbm %s148_s2, 32 }
  0x9d   :  { %p91_p5 = scmp.ne.s32.totalorder %s148_s2, %s90_s20  ;;  %p94_p6 = scmp.lt.u32.totalorder %s90_s20, %s148_s2 }
  0x9f   :  { %p96_p7 = pnand %p94_p6, %p91_p5 }
  0xa1   :  { %99 = shalt.err (!%p96_p7)
}
  0xa2   :  { %69 = dma.vmem_to_hbm [thread:$0]  %s67_s0, 32, %s148_s2, [#allocation3]  }
  0xa3   :  { %100 = dma.done.wait [#allocation3], 32  }
  0xa4   :  { %101 = vsyncadd [#allocation3], 4294967264 }
  0xa5   :  { %73 = vsyncpa [#allocation3], 1 }

</bundles_post_ra>
